<compile_context>
chip_gen: v6e
topology: v6e:2x2x1
jax: 0.10.0
libtpu: 0.0.40
codegen_flags: <defaults>
</compile_context>

<pallas_src>
import jax
import jax.numpy as jnp
from jax.experimental import pallas as pl
from jax.experimental.pallas import tpu as pltpu


def _cdiv(a, b):
    return -(-a // b)


def _round_up(x, m):
    return _cdiv(x, m) * m


def _detect_num_tensorcores():
    """Best-effort TensorCores per chip (v7x: 2, v5e/v6e: 1)."""
    try:
        info = pltpu.get_tpu_info()
        for name in ("num_cores", "cores_per_chip", "num_tensorcores", "core_count"):
            v = getattr(info, name, None)
            if isinstance(v, int) and v >= 1:
                return min(2, v)
    except Exception:
        pass
    try:
        v = getattr(jax.devices()[0], "num_cores", None)
        if isinstance(v, int) and v >= 1:
            return min(2, v)
    except Exception:
        pass
    return 1


def _vmem_limit_bytes():
    """Per-generation scoped VMEM limit with headroom (v7x ~48 MiB, v5e/v6e ~100 MiB)."""
    cap = 128 * 1024 * 1024
    try:
        info = pltpu.get_tpu_info()
        for name in ("vmem_capacity_bytes", "vmem_size_bytes", "vmem_bytes"):
            v = getattr(info, name, None)
            if isinstance(v, int) and v > 0:
                cap = v
                break
    except Exception:
        pass
    return int(min(max(cap - 16 * 1024 * 1024, 32 * 1024 * 1024), 100 * 1024 * 1024))


def _make_ldam_kernel(tiles_per_part: int, tile_n: int, n_rows: int):
    def kernel(logit_ref, sm_ref, tgt_ref, out_ref, acc_ref):
        p = pl.program_id(0)
        t = pl.program_id(1)

        @pl.when(t == 0)
        def _init():
            acc_ref[...] = jnp.zeros_like(acc_ref)

        x = logit_ref[...]                              # (tile_n, C), native dtype
        sm = sm_ref[...].astype(x.dtype)                # (1, C)  = s * m_list
        tgt = tgt_ref[...]                              # (tile_n, 1) int32

        tn, c = x.shape
        col = jax.lax.broadcasted_iota(jnp.int32, (tn, c), 1)
        is_tgt = col == tgt

        # LDAM margin: subtract s*m_list[j] only at the target column j (single select,
        # native dtype).  Upcast to f32 only for the log-sum-exp path.
        adj = jnp.where(is_tgt, x - sm, x).astype(jnp.float32)

        tgt_logit = jnp.sum(jnp.where(is_tgt, adj, 0.0), axis=-1, keepdims=True)

        # Numerically-stable log-sum-exp over classes.
        mx = jnp.max(adj, axis=-1, keepdims=True)
        lse = mx + jnp.log(jnp.sum(jnp.exp(adj - mx), axis=-1, keepdims=True))

        # Mask rows past the true batch size (ragged last block and any clamped
        # duplicate blocks).  jnp.where (select) so garbage rows never poison the sum.
        row = (p * tiles_per_part + t) * tile_n + jax.lax.broadcasted_iota(
            jnp.int32, (tn, 1), 0)
        acc_ref[...] += jnp.where(row < n_rows, lse - tgt_logit, 0.0)

        @pl.when(t == tiles_per_part - 1)
        def _finalize():
            # Single cross-sublane reduction per part; one lane-dense (8,128) output
            # block per part, wrapper reads element [p*8, 0].
            out_ref[...] = jnp.full(out_ref.shape, jnp.sum(acc_ref[...]),
                                    dtype=jnp.float32)

    return kernel


def ldam_loss(logit, target, cls_num_list, max_m=0.5, s=30.0,
              tile_n=None, num_parts=None):
    """logit: (N, C) float (any dtype), target: (N,) int, cls_num_list: (C,) float."""
    N, C = logit.shape

    # Module __init__: class-dependent margins, pre-scaled by s in the wrapper.
    cls = jnp.asarray(cls_num_list, jnp.float32)
    m_list = 1.0 / jnp.sqrt(jnp.sqrt(cls))
    m_list = m_list * (max_m / jnp.max(m_list))
    s_m_list = (m_list * jnp.float32(s)).reshape(1, C).astype(jnp.float32)

    if num_parts is None:
        num_parts = _detect_num_tensorcores()
    num_parts = max(1, int(num_parts))

    vmem_limit = _vmem_limit_bytes()

    if tile_n is None:
        # Byte-budget sizing (f32-equivalent bytes so in-kernel f32 temporaries are
        # bounded too); row cap keeps the lane-padded (tile_n, 1) column scratch small.
        per_buffer = max(2 * 1024 * 1024, min(12 * 1024 * 1024, vmem_limit // 8))
        rows_by_vmem = max(8, (per_buffer // max(1, C * 4)) // 8 * 8)
        rows_per_part = _round_up(_cdiv(N, num_parts), 8)
        tile_n = min(rows_by_vmem, 8192, rows_per_part)
        if num_parts > 1:
            # Keep >= ~4 tiles per core so each core's BlockSpec pipeline warms up.
            tile_n = min(tile_n, max(8, _round_up(_cdiv(N, num_parts * 4), 8)))
    tile_n = max(8, _round_up(int(tile_n), 8))

    total_tiles = _cdiv(N, tile_n)
    num_parts = max(1, min(num_parts, total_tiles))
    tiles_per_part = _cdiv(total_tiles, num_parts)
    last_blk = total_tiles - 1  # clamp target for any fully-out-of-range block

    target_col = target.reshape(N, 1).astype(jnp.int32)

    kernel = _make_ldam_kernel(tiles_per_part, tile_n, N)

    def _blk(p, t):
        return (jnp.minimum(p * tiles_per_part + t, last_blk), 0)

    out = pl.pallas_call(
        kernel,
        out_shape=jax.ShapeDtypeStruct((num_parts * 8, 128), jnp.float32),
        grid_spec=pltpu.PrefetchScalarGridSpec(
            num_scalar_prefetch=0,
            grid=(num_parts, tiles_per_part),
            in_specs=[
                pl.BlockSpec((tile_n, C), _blk),                 # logits, native dtype
                pl.BlockSpec((1, C), lambda p, t: (0, 0)),       # s * m_list (constant)
                pl.BlockSpec((tile_n, 1), _blk),                 # targets
            ],
            out_specs=pl.BlockSpec((8, 128), lambda p, t: (p, 0)),
            scratch_shapes=[pltpu.VMEM((tile_n, 1), jnp.float32)],
        ),
        compiler_params=pltpu.CompilerParams(
            dimension_semantics=("parallel", "arbitrary"),
            vmem_limit_bytes=vmem_limit,
        ),
    )(logit, s_m_list, target_col)

    partial_sums = out[::8, 0]                # one partial sum per part
    return jnp.sum(partial_sums) / N


def _ldam_reference(logit, target, cls_num_list, max_m, s):
    """Pure-JAX mirror of the PyTorch forward."""
    N, C = logit.shape
    m_list = 1.0 / jnp.sqrt(jnp.sqrt(cls_num_list))
    m_list = m_list * (max_m / jnp.max(m_list))
    batch_m = m_list[target].reshape(-1, 1)
    logit_m = logit - batch_m * s
    index = jnp.arange(C)[None, :] == target[:, None]
    output = jnp.where(index, logit_m, logit)
    return jnp.mean(jax.scipy.special.logsumexp(output, axis=-1)
                    - output[jnp.arange(N), target])


if __name__ == "__main__":
    key = jax.random.PRNGKey(0)
    max_m, s = 0.5, 30.0

    # Two small cases: one aligned batch, one ragged batch (exercises the
    # in-kernel row masking that replaced the wrapper jnp.pad).
    for case_i, (N, C) in enumerate([(8, 16), (13, 40)]):
        k1, k2 = jax.random.split(jax.random.fold_in(key, case_i))
        logit = jax.random.normal(k1, (N, C), dtype=jnp.float32)
        target = jax.random.randint(k2, (N,), 0, C, dtype=jnp.int32)
        # Deterministic synthetic per-class sample counts (module __init__ argument).
        cls_num_list = jnp.arange(1.0, C + 1.0, dtype=jnp.float32) * 10.0

        loss = ldam_loss(logit, target, cls_num_list, max_m=max_m, s=s)
        jax.block_until_ready(loss)

        ref = _ldam_reference(logit, target, cls_num_list, max_m, s)
        assert jnp.isfinite(loss), (N, C, loss)
        assert jnp.allclose(loss, ref, rtol=1e-5, atol=1e-4), (N, C, loss, ref)

    print("KERNEL_OK")
</pallas_src>

<mosaic_0001>
module attributes {stable_mosaic.version = 11 : i64} {
  func.func @kernel(%arg0: i32, %arg1: i32, %arg2: memref<8x16xf32, #tpu.memory_space<vmem>>, %arg3: memref<1x16xf32, #tpu.memory_space<vmem>>, %arg4: memref<8x1xi32, #tpu.memory_space<vmem>>, %arg5: memref<8x128xf32, #tpu.memory_space<vmem>>, %arg6: memref<8x1xf32, #tpu.memory_space<vmem>>) attributes {dimension_semantics = [#tpu.dimension_semantics<parallel>, #tpu.dimension_semantics<arbitrary>], iteration_bounds = array<i64: 1, 1>, scalar_prefetch = 0 : i64, scratch_operands = 1 : i64, tpu.core_type = #tpu.core_type<tc>, window_params = [{transform_indices = @transform_0, window_bounds = array<i64: 8, 16>}, {pipeline_mode = #tpu.pipeline_mode<synchronous>, transform_indices = @transform_1, window_bounds = array<i64: 1, 16>}, {transform_indices = @transform_2, window_bounds = array<i64: 8, 1>}, {transform_indices = @transform_3, window_bounds = array<i64: 8, 128>}]} {
    %c0_i32 = arith.constant 0 : i32
    %0 = arith.cmpi eq, %arg1, %c0_i32 : i32
    %1 = arith.extui %0 : i1 to i32
    %c0_i32_0 = arith.constant 0 : i32
    %2 = arith.cmpi ne, %1, %c0_i32_0 : i32
    scf.if %2 {
      %cst_17 = arith.constant 0.000000e+00 : f32
      %42 = vector.broadcast %cst_17 : f32 to vector<8x1xf32>
      %c0_18 = arith.constant 0 : index
      %c0_19 = arith.constant 0 : index
      %43 = vector.load %arg6[%c0_18, %c0_19] : memref<8x1xf32, #tpu.memory_space<vmem>>, vector<8x1xf32>
      tpu.vector_store %arg6[%c0_18, %c0_19], %42 {strides = array<i32>} : memref<8x1xf32, #tpu.memory_space<vmem>>, vector<8x1xf32>,
    } else {
    }
    %c0 = arith.constant 0 : index
    %c0_1 = arith.constant 0 : index
    %3 = vector.load %arg2[%c0, %c0_1] : memref<8x16xf32, #tpu.memory_space<vmem>>, vector<8x16xf32>
    %c0_2 = arith.constant 0 : index
    %c0_3 = arith.constant 0 : index
    %4 = vector.load %arg3[%c0_2, %c0_3] : memref<1x16xf32, #tpu.memory_space<vmem>>, vector<1x16xf32>
    %c0_4 = arith.constant 0 : index
    %c0_5 = arith.constant 0 : index
    %5 = vector.load %arg4[%c0_4, %c0_5] : memref<8x1xi32, #tpu.memory_space<vmem>>, vector<8x1xi32>
    %6 = tpu.iota {dimensions = array<i32: 1>} : vector<8x16xi32>
    %7 = vector.broadcast %5 : vector<8x1xi32> to vector<8x16xi32>
    %8 = arith.cmpi eq, %6, %7 : vector<8x16xi32>
    %9 = vector.broadcast %4 : vector<1x16xf32> to vector<8x16xf32>
    %10 = arith.subf %3, %9 : vector<8x16xf32>
    %11 = arith.select %8, %10, %3 : vector<8x16xi1>, vector<8x16xf32>
    %cst = arith.constant 0.000000e+00 : f32
    %12 = vector.broadcast %cst : f32 to vector<8x16xf32>
    %13 = arith.select %8, %11, %12 : vector<8x16xi1>, vector<8x16xf32>
    %cst_6 = arith.constant dense<0.000000e+00> : vector<8xf32>
    %14 = vector.multi_reduction <add>, %13, %cst_6 [1] : vector<8x16xf32> to vector<8xf32>
    %15 = vector.shape_cast %14 : vector<8xf32> to vector<8x1xf32>
    %cst_7 = arith.constant dense<0xFF800000> : vector<8xf32>
    %16 = vector.multi_reduction <maximumf>, %11, %cst_7 [1] : vector<8x16xf32> to vector<8xf32>
    %17 = vector.shape_cast %16 : vector<8xf32> to vector<8x1xf32>
    %18 = vector.broadcast %17 : vector<8x1xf32> to vector<8x16xf32>
    %19 = arith.subf %11, %18 : vector<8x16xf32>
    %20 = math.exp %19 : vector<8x16xf32>
    %cst_8 = arith.constant dense<0.000000e+00> : vector<8xf32>
    %21 = vector.multi_reduction <add>, %20, %cst_8 [1] : vector<8x16xf32> to vector<8xf32>
    %22 = vector.shape_cast %21 : vector<8xf32> to vector<8x1xf32>
    %23 = math.log %22 : vector<8x1xf32>
    %24 = arith.addf %17, %23 : vector<8x1xf32>
    %c1_i32 = arith.constant 1 : i32
    %25 = arith.muli %arg0, %c1_i32 : i32
    %26 = arith.addi %25, %arg1 : i32
    %c8_i32 = arith.constant 8 : i32
    %27 = arith.muli %26, %c8_i32 : i32
    %28 = tpu.iota {dimensions = array<i32: 0>} : vector<8x1xi32>
    %29 = vector.broadcast %27 : i32 to vector<8x1xi32>
    %30 = arith.addi %29, %28 : vector<8x1xi32>
    %c0_9 = arith.constant 0 : index
    %c0_10 = arith.constant 0 : index
    %31 = vector.load %arg6[%c0_9, %c0_10] : memref<8x1xf32, #tpu.memory_space<vmem>>, vector<8x1xf32>
    %c8_i32_11 = arith.constant 8 : i32
    %32 = vector.broadcast %c8_i32_11 : i32 to vector<8x1xi32>
    %33 = arith.cmpi slt, %30, %32 : vector<8x1xi32>
    %34 = arith.subf %24, %15 : vector<8x1xf32>
    %cst_12 = arith.constant 0.000000e+00 : f32
    %35 = vector.broadcast %cst_12 : f32 to vector<8x1xf32>
    %36 = arith.select %33, %34, %35 : vector<8x1xi1>, vector<8x1xf32>
    %37 = arith.addf %31, %36 : vector<8x1xf32>
    %c0_13 = arith.constant 0 : index
    %c0_14 = arith.constant 0 : index
    %38 = vector.load %arg6[%c0_13, %c0_14] : memref<8x1xf32, #tpu.memory_space<vmem>>, vector<8x1xf32>
    tpu.vector_store %arg6[%c0_13, %c0_14], %37 {strides = array<i32>} : memref<8x1xf32, #tpu.memory_space<vmem>>, vector<8x1xf32>,
    %c0_i32_15 = arith.constant 0 : i32
    %39 = arith.cmpi eq, %arg1, %c0_i32_15 : i32
    %40 = arith.extui %39 : i1 to i32
    %c0_i32_16 = arith.constant 0 : i32
    %41 = arith.cmpi ne, %40, %c0_i32_16 : i32
    scf.if %41 {
      %c0_17 = arith.constant 0 : index
      %c0_18 = arith.constant 0 : index
      %42 = vector.load %arg6[%c0_17, %c0_18] : memref<8x1xf32, #tpu.memory_space<vmem>>, vector<8x1xf32>
      %43 = vector.shape_cast %42 : vector<8x1xf32> to vector<1x8x1xf32>
      %cst_19 = arith.constant dense<0.000000e+00> : vector<1xf32>
      %44 = vector.multi_reduction <add>, %43, %cst_19 [1, 2] : vector<1x8x1xf32> to vector<1xf32>
      %45 = vector.shape_cast %44 : vector<1xf32> to vector<1x1x1xf32>
      %46 = vector.extract %45[0, 0, 0] : f32 from vector<1x1x1xf32>
      %47 = vector.broadcast %46 : f32 to vector<8x128xf32>
      %c0_20 = arith.constant 0 : index
      %c0_21 = arith.constant 0 : index
      %48 = vector.load %arg5[%c0_20, %c0_21] : memref<8x128xf32, #tpu.memory_space<vmem>>, vector<8x128xf32>
      tpu.vector_store %arg5[%c0_20, %c0_21], %47 {strides = array<i32>} : memref<8x128xf32, #tpu.memory_space<vmem>>, vector<8x128xf32>,
    } else {
    }
    return
  }
  func.func @transform_0(%arg0: i32, %arg1: i32) -> (i32, i32) {
    %c1_i32 = arith.constant 1 : i32
    %0 = arith.muli %arg0, %c1_i32 : i32
    %1 = arith.addi %0, %arg1 : i32
    %c0_i32 = arith.constant 0 : i32
    %2 = arith.minsi %1, %c0_i32 : i32
    %c0_i32_0 = arith.constant 0 : i32
    %c0_i32_1 = arith.constant 0 : i32
    return %2, %c0_i32_0 : i32, i32
  }
  func.func @transform_1(%arg0: i32, %arg1: i32) -> (i32, i32) {
    %c0_i32 = arith.constant 0 : i32
    %c0_i32_0 = arith.constant 0 : i32
    %c0_i32_1 = arith.constant 0 : i32
    return %c0_i32, %c0_i32_0 : i32, i32
  }
  func.func @transform_2(%arg0: i32, %arg1: i32) -> (i32, i32) {
    %c1_i32 = arith.constant 1 : i32
    %0 = arith.muli %arg0, %c1_i32 : i32
    %1 = arith.addi %0, %arg1 : i32
    %c0_i32 = arith.constant 0 : i32
    %2 = arith.minsi %1, %c0_i32 : i32
    %c0_i32_0 = arith.constant 0 : i32
    %c0_i32_1 = arith.constant 0 : i32
    return %2, %c0_i32_0 : i32, i32
  }
  func.func @transform_3(%arg0: i32, %arg1: i32) -> (i32, i32) {
    %c0_i32 = arith.constant 0 : i32
    %c0_i32_0 = arith.constant 0 : i32
    return %arg0, %c0_i32 : i32, i32
  }
}

</mosaic_0001>

<bundles_post_ra>
// kernel: tpu_custom_call.1
= control target key start
LH: loop header
LB: loop body
LE: loop exit
PB: predicated region body
PF: predicated region fallthrough
CT: control target
= control target key end

     0   :  { %v197_v1 = vmov 0   ;;  %s232_s0 = inlined_call_operand.vmem [shape: f32[8,16], index: 0, kind: input, shape index: {}]   ;;  %s233_s1 = inlined_call_operand.vmem [shape: f32[1,16], index: 1, kind: input, shape index: {}]   ;;  %s234_s2 = inlined_call_operand.vmem [shape: s32[8,1], index: 2, kind: input, shape index: {}]   ;;  %s235_s3 = inlined_call_operand.hbm [shape: f32[8,128], index: 3, kind: output, shape index: {}]  }
   0x1   :  { %v77_v0 = vld [vmem:[%s234_s2] sm:$0xff]  ;;  %170 = vset.pattern.permute.xlu0 %v197_v1 }
   0x2   :  { %8 = vsyncpa [#allocation4], 0  ;;  %81 = vperm.xlu0 %170, %v77_v0   ;;  %v78_v2 = vlaneseq  ;;  %v75_v3 = vld [vmem:[%s232_s0] sm:$0xff]  ;;  %vm93_vm0 = vcmask 130048   ;;  %vm73_vm2 = vcmask 7168   ;;  %v198_v17 = vmov 0.0  }
   0x3   :  { %v164_v4 = vld [vmem:[%s233_s1] ss:$0 sm:$0xff]  ;;  %74 = vst.msk [vmem:[#allocation2] sm:$0xff] %vm73_vm2, %v198_v17  ;;  %s199_s0 = smov [#allocation3]  }
   0x4   :  { %v79_v5 = vand.u32 127, %v78_v2  ;;  %v90_v6 = vsub.f32 %v75_v3, %v164_v4  ;;  %s144_s1 = sshll.u32 %s199_s0, 4  ;;  %s145_s1 = int_to_ptr.vmem [resolvable:$true] %s144_s1 }
   0x5   :  { %s175_s18 = scalar_lea.vmem %s145_s1, 128  ;;  %p180_p1 = scmp.lt.s32.totalorder %s145_s1, %s145_s1 }
   0x6   :  { %p176_p0 = scmp.ne.s32.totalorder %s145_s1, %s175_s18  ;;  %p181_p2 = scmp.lt.s32.totalorder %s175_s18, %s175_s18 }
   0x8   :  { %p182_p3 = por %p181_p2, %p180_p1 }
   0xa   :  { %v115_v23 = vld [vmem:[#allocation2] sm:$0xff]  ;;  %p183_p4 = pnand %p182_p3, %p176_p0 }
  0x7d   :  { %v82_v7 = vpop.permute.xlu0 %81 }
  0x7e   :  { %vm83_vm1 = vcmp.eq.s32.totalorder %v79_v5, %v82_v7 }
  0x7f   :  { %v91_v8 = vsel %vm83_vm1, %v90_v6, %v75_v3  ;;  %v92_v9 = vsel %vm83_vm1, %v90_v6, 0.0 }
  0x80   :  { %v97_v10 = vsel %vm93_vm0, %v91_v8, -inf  ;;  %v94_v16 = vsel %vm93_vm0, %v92_v9, 0.0 }
  0x81   :  { %98 = vmax.xlane.f32.xlu0 %v97_v10 }
 0x10a   :  { %v99_v11 = vpop.xlane.xlu0 %98 }
 0x10b   :  { %v100_v12 = vsub.f32 %v91_v8, %v99_v11 }
 0x10d   :  { %v101_v13 = vmul.f32 1.442695, %v100_v12 }
 0x10f   :  { %171 = vpow2.f32 %v101_v13 }
 0x11c   :  { %v172_v14 = vpop.eup %171 }
 0x11d   :  { %v103_v15 = vsel %vm93_vm0, %v172_v14, 0.0 }
 0x11e   :  { %104 = vadd.xlane.f32.xlu1 %v103_v15 }
 0x122   :  { %95 = vadd.xlane.f32.xlu1 %v94_v16 }
 0x1a7   :  { %v105_v18 = vpop.xlane.xlu1 %104 }
 0x1a8   :  { %173 = vlog2.f32 %v105_v18 }
 0x1ab   :  { %v96_v22 = vpop.xlane.xlu1 %95 }
 0x1b5   :  { %v174_v19 = vpop.eup %173 }
 0x1b6   :  { %v107_v20 = vmul.f32 0.6931472, %v174_v19 }
 0x1b8   :  { %v108_v21 = vadd.f32 %v107_v20, %v99_v11 }
 0x1ba   :  { %v117_v24 = vsub.f32 %v108_v21, %v96_v22 }
 0x1bc   :  { %v119_v25 = vadd.f32 %v117_v24, %v115_v23 }
 0x1be   :  { %121 = vst.msk [vmem:[#allocation2] sm:$0xff] %vm73_vm2, %v119_v25 }
 0x1c5   :  { %v125_v26 = vld [vmem:[#allocation2] sm:$0xff] }
 0x1c6   :  { %v126_v27 = vsel %vm73_vm2, %v125_v26, 0.0 }
 0x1c7   :  { %127 = vadd.xlane.f32.xlu1 %v126_v27 }
 0x250   :  { %v128_v28 = vpop.xlane.xlu1 %127 }
 0x251   :  { %v129_v29 = vrot.slane %v128_v28, 4 }
 0x253   :  { %v130_v30 = vadd.f32 %v129_v29, %v128_v28 }
 0x255   :  { %v131_v31 = vrot.slane %v130_v30, 2 }
 0x257   :  { %v132_v32 = vadd.f32 %v131_v31, %v130_v30 }
 0x259   :  { %v133_v33 = vrot.slane %v132_v32, 1 }
 0x25b   :  { %v134_v34 = vadd.f32 %v133_v33, %v132_v32 }
 0x25d   :  { %165 = vpush %v134_v34 }
 0x28e   :  { %s166_s2 = spop %165 }
 0x28f   :  { %v136_v35 = vstv %s166_s2 }
 0x290   :  { %137 = vst [vmem:[#allocation3] sm:$0xff] %v136_v35 }
 0x291   :  { %186 = shalt.err (!%p183_p4)
}
 0x292   :  { %147 = dma.vmem_to_hbm [thread:$0]  %s145_s1, 128, %s235_s3, [#allocation4]  }
 0x293   :  { %195 = dma.done.wait [#allocation4], 128  }
 0x294   :  { %196 = vsyncadd [#allocation4], 4294967168 }
 0x295   :  { %151 = vsyncpa [#allocation4], 1 }

</bundles_post_ra>
